<compile_context>
chip_gen: v5e
topology: v5e:2x2
jax: 0.10.0
libtpu: 0.0.40
codegen_flags: <defaults>
</compile_context>

<pallas_src>
import math
import numpy as np

import jax
import jax.numpy as jnp
from jax.experimental import pallas as pl
from jax.experimental.pallas import tpu as pltpu


def _round_up(x, m):
    return ((x + m - 1) // m) * m


_MAX_VPU_CONTRACT_L = 16  # below this, contract on the VPU instead of the MXU


def _contract(x, wT):
    """x:[tc,L] @ wT:[L,N] -> [tc,N] in f32.

    For tiny L (n_clusters ~ 4..16) an MXU matmul pads the contraction to the
    128/256-deep systolic array (<4% utilization) and adds push/pop latency;
    an unrolled chain of VPU broadcast-FMAs is cheaper and frees the MXU.
    """
    L = x.shape[1]
    if L <= _MAX_VPU_CONTRACT_L:
        acc = x[:, 0:1] * wT[0:1, :]
        for l in range(1, L):
            acc = acc + x[:, l:l + 1] * wT[l:l + 1, :]
        return acc
    return jnp.dot(x, wT, preferred_element_type=jnp.float32)


# ------------------------------------------------------------------ kernel ---
def decoder_kernel(clust_ref, rho_wT_ref, log_bias_ref, logit_w_ref,
                   log_rho_ref, logit_ref):
    x = clust_ref[...]                                           # (tc, L) f32

    # n_layers == 0  ->  decoder.nn is an empty Sequential (identity)
    # rho_delta = nn_output @ rho_weight_full.T ; then + log(rho_bias)
    z = _contract(x, rho_wT_ref[...]) + log_bias_ref[...]

    # softmax(..., -1) followed by log() in forward_  ==  log_softmax
    m = jnp.max(z, axis=-1, keepdims=True)
    e = jnp.exp(z - m)
    denom = jnp.sum(e, axis=-1, keepdims=True)
    log_rho_ref[...] = (z - m - jnp.log(denom)).astype(log_rho_ref.dtype)

    # mixture_delta = einsum('cl,glk->cgk', nn_output, logit_weight[genes_oi])
    # expressed as a single [L, G_oi*K] contraction
    logit_ref[...] = _contract(x, logit_w_ref[...]).astype(logit_ref.dtype)


def decoder_forward(clustering, rho_wT, log_rho_bias, logit_weight_oi,
                    *, max_tile_cells=256,
                    vmem_budget_bytes=24 * 1024 * 1024):
    """Returns (log_rho [C,G], mixture_delta [C,G_oi,K])."""
    C, L = clustering.shape
    G = rho_wT.shape[1]
    G_oi, L2, K = logit_weight_oi.shape
    assert L2 == L
    GK = G_oi * K

    # W2[l, g*K + k] = logit_weight[genes_oi][g, l, k]  (small per-minibatch op)
    logit_w_flat = jnp.transpose(logit_weight_oi, (1, 0, 2)).reshape(L, GK)
    log_bias_2d = log_rho_bias.reshape(1, G)

    # --- lane-dense padding of the output feature axes (multiples of 128) ---
    Gp = _round_up(G, 128)
    GKp = _round_up(GK, 128)
    if Gp != G:
        rho_wT = jnp.pad(rho_wT, ((0, 0), (0, Gp - G)))
        # padded columns get a huge negative bias -> zero softmax contribution
        log_bias_2d = jnp.pad(log_bias_2d, ((0, 0), (0, Gp - G)),
                              constant_values=-1e30)
    if GKp != GK:
        logit_w_flat = jnp.pad(logit_w_flat, ((0, 0), (0, GKp - GK)))

    # --- choose the cell tile under an explicit VMEM budget -----------------
    # per-row bytes: clustering tile (x2 bufs) + both output tiles (x2 bufs)
    bytes_per_row = 4 * (2 * L + 2 * Gp + 2 * GKp)
    # grid-invariant weight blocks (double-buffered by the pipeline)
    weight_bytes = 4 * 2 * (L * Gp + Gp + L * GKp)
    avail = max(vmem_budget_bytes - weight_bytes, 8 * bytes_per_row)
    tile = int(min(max_tile_cells, avail // bytes_per_row))
    tile = max(8, (tile // 8) * 8)
    if C > 8:
        # keep >= 2 grid steps so both v7x TensorCores get work
        tile = min(tile, _round_up((C + 1) // 2, 8))
    Cp = _round_up(C, tile)
    if Cp != C:
        clustering = jnp.pad(clustering, ((0, Cp - C), (0, 0)))

    grid = (Cp // tile,)

    flops = 2 * Cp * L * (Gp + GKp)
    transcendentals = Cp * Gp + Cp
    bytes_accessed = 4 * (Cp * L + L * Gp + Gp + L * GKp + Cp * Gp + Cp * GKp)

    vmem_needed = weight_bytes + tile * bytes_per_row + (2 << 20)
    vmem_limit = int(min(60 * 2**20, max(32 * 2**20, 3 * vmem_needed // 2)))

    log_rho_p, logit_p = pl.pallas_call(
        decoder_kernel,
        out_shape=(
            jax.ShapeDtypeStruct((Cp, Gp), jnp.float32),
            jax.ShapeDtypeStruct((Cp, GKp), jnp.float32),
        ),
        grid_spec=pltpu.PrefetchScalarGridSpec(
            num_scalar_prefetch=0,
            grid=grid,
            in_specs=[
                pl.BlockSpec((tile, L), lambda i: (i, 0)),
                pl.BlockSpec((L, Gp), lambda i: (0, 0)),
                pl.BlockSpec((1, Gp), lambda i: (0, 0)),
                pl.BlockSpec((L, GKp), lambda i: (0, 0)),
            ],
            out_specs=[
                pl.BlockSpec((tile, Gp), lambda i: (i, 0)),
                pl.BlockSpec((tile, GKp), lambda i: (i, 0)),
            ],
        ),
        compiler_params=pltpu.CompilerParams(
            dimension_semantics=("parallel",),
            vmem_limit_bytes=vmem_limit,
        ),
        cost_estimate=pl.CostEstimate(
            flops=flops,
            transcendentals=transcendentals,
            bytes_accessed=bytes_accessed,
        ),
    )(clustering, rho_wT, log_bias_2d, logit_w_flat)

    log_rho = log_rho_p[:C, :G]
    mixture_delta = logit_p[:C, :GK].reshape(C, G_oi, K)
    return log_rho, mixture_delta


# ------------------------------------------------------------- model glue ---
def normal_log_prob(x, log_scale):
    scale = jnp.exp(log_scale)
    return -0.5 * (x / scale) ** 2 - log_scale - 0.5 * math.log(2.0 * math.pi)


def prepare_params(params):
    """One-time layout work hoisted out of the per-step forward path:
    rho_weight [G,L] -> [L,G] (genes on the lane axis) and log(rho_bias)."""
    return dict(
        rho_wT=jnp.asarray(params["rho_weight"]).T,
        log_rho_bias=jnp.log(jnp.asarray(params["rho_bias"])),
        logit_weight=jnp.asarray(params["logit_weight"]),
        mixture_delta_p_scale=jnp.asarray(params["mixture_delta_p_scale"]),
        rho_delta_p_scale=jnp.asarray(params["rho_delta_p_scale"]),
    )


def model_forward(prepared, coordinates, clustering, genes_oi,
                  local_cellxgene_ix, localcellxgene_ix, local_gene_ix):
    """Mirror of Model.forward_ returning (elbo, aux)."""
    n_total_genes = prepared["rho_wT"].shape[1]
    C = clustering.shape[0]
    K = prepared["logit_weight"].shape[-1]
    G_oi = genes_oi.shape[0]

    logit_weight_oi = prepared["logit_weight"][genes_oi]         # [G_oi, L, K]

    # ---- hot path (contractions + log_softmax) runs in the Pallas kernel ----
    log_rho, mixture_delta = decoder_forward(
        clustering, prepared["rho_wT"], prepared["log_rho_bias"],
        logit_weight_oi)

    # rho_cuts = softmax(...).flatten()[localcellxgene_ix]; log taken right after
    log_rho_cuts = log_rho.reshape(-1)[localcellxgene_ix]

    # mixture_delta per cut (gathered, fed to the spline flow)
    mixture_delta_cellxgene = mixture_delta.reshape(C * G_oi, K)
    mixture_delta_cuts = mixture_delta_cellxgene[local_cellxgene_ix]
    del mixture_delta_cuts, coordinates, local_gene_ix
    # TODO(synk): DifferentialQuadraticSplineStack/TransformedDistribution.log_prob
    # is not provided with the module; likelihood_mixture is set to 0 here.
    likelihood_mixture = jnp.zeros_like(log_rho_cuts)

    likelihood_overall = log_rho_cuts + math.log(n_total_genes)
    likelihood = likelihood_mixture + likelihood_overall
    elbo = -jnp.sum(likelihood)

    # mixture delta regularization (Normal(0, exp(mixture_delta_p_scale)))
    elbo = elbo - jnp.sum(
        normal_log_prob(logit_weight_oi, prepared["mixture_delta_p_scale"]))
    # rho delta regularization (Normal(0, exp(rho_delta_p_scale)));
    # rho_wT[:, genes_oi] holds exactly the rho_weight[genes_oi] entries.
    elbo = elbo - jnp.sum(
        normal_log_prob(prepared["rho_wT"][:, genes_oi],
                        prepared["rho_delta_p_scale"]))

    return elbo, (log_rho, mixture_delta)


# ------------------------------------------------------------------- main ---
if __name__ == "__main__":
    key = jax.random.PRNGKey(0)

    # small, shape-consistent synthetic problem; deliberately NOT aligned to
    # (8,128) so the padding / lane-dense paths are exercised
    n_cells = 30          # cells in the minibatch (padded to 32 in-kernel)
    n_clusters = 4        # latent dim (decoder_n_layers=0 -> nn is identity)
    n_total_genes = 300   # fragments.n_genes (padded to 384 lanes in-kernel)
    n_genes_oi = 12       # genes in the minibatch
    nbins = (5, 4, 3)     # n_delta_mixture_components assumed = sum(nbins)
    n_components = sum(nbins)          # 12 -> G_oi*K = 144 (padded to 256)
    n_cuts = 64
    n_fragments = 512

    ks = jax.random.split(key, 9)

    # --- deterministic parameter init (mirrors Decoder.__init__) ---
    stdv = 1.0 / math.sqrt(n_clusters)
    rho_weight = jax.random.uniform(
        ks[0], (n_total_genes, n_clusters), jnp.float32, -stdv, stdv)
    # the module zero-inits logit_weight; small random values here make the
    # numeric check of the mixture_delta path non-trivial
    logit_weight = 0.01 * jax.random.normal(
        ks[8], (n_total_genes, n_clusters, n_components), jnp.float32)

    # rho_bias from synthetic fragments.mapping
    frag_cells = jax.random.randint(ks[1], (n_fragments,), 0, n_cells)
    frag_genes = jax.random.randint(ks[2], (n_fragments,), 0, n_total_genes)
    libsize = jnp.bincount(frag_cells, length=n_cells)
    rho_bias = (jnp.bincount(frag_genes, length=n_total_genes).astype(jnp.float32)
                / n_cells / jnp.mean(libsize.astype(jnp.float32)))
    min_rho_bias = 1e-5
    rho_bias = min_rho_bias + (1.0 - min_rho_bias) * rho_bias

    params = dict(
        rho_weight=rho_weight,
        logit_weight=logit_weight,
        rho_bias=rho_bias,
        mixture_delta_p_scale=jnp.asarray(math.log(1.0), jnp.float32),
        rho_delta_p_scale=jnp.asarray(math.log(1.0), jnp.float32),
    )
    prepared = prepare_params(params)   # one-time layout hoisting (not per call)

    # --- deterministic minibatch data ---
    cluster_assign = jax.random.randint(ks[3], (n_cells,), 0, n_clusters)
    clustering = jax.nn.one_hot(cluster_assign, n_clusters, dtype=jnp.float32)

    genes_oi = jax.random.choice(
        ks[4], n_total_genes, (n_genes_oi,), replace=False)

    cut_cell = jax.random.randint(ks[5], (n_cuts,), 0, n_cells)
    local_gene_ix = jax.random.randint(ks[6], (n_cuts,), 0, n_genes_oi)
    local_cellxgene_ix = cut_cell * n_genes_oi + local_gene_ix
    localcellxgene_ix = cut_cell * n_total_genes + genes_oi[local_gene_ix]
    coordinates = jax.random.uniform(ks[7], (n_cuts,), jnp.float32, -1.0, 1.0)

    # --- run ---
    elbo, (log_rho, mixture_delta) = jax.jit(model_forward)(
        prepared, coordinates, clustering, genes_oi,
        local_cellxgene_ix, localcellxgene_ix, local_gene_ix)
    jax.block_until_ready(elbo)

    # --- reference check of the Pallas-computed hot path ---
    rho_delta_ref = clustering @ rho_weight.T
    log_rho_ref = jax.nn.log_softmax(jnp.log(rho_bias)[None, :] + rho_delta_ref, -1)
    mixture_delta_ref = jnp.einsum("cl,glk->cgk", clustering, logit_weight[genes_oi])
    np.testing.assert_allclose(np.asarray(log_rho), np.asarray(log_rho_ref),
                               rtol=1e-5, atol=1e-5)
    np.testing.assert_allclose(np.asarray(mixture_delta),
                               np.asarray(mixture_delta_ref),
                               rtol=1e-5, atol=1e-5)
    assert np.isfinite(float(elbo))

    print("KERNEL_OK")
</pallas_src>

<mosaic_0001>
module attributes {stable_mosaic.version = 11 : i64} {
  func.func @decoder_kernel(%arg0: i32, %arg1: memref<16x4xf32, #tpu.memory_space<vmem>>, %arg2: memref<4x384xf32, #tpu.memory_space<vmem>>, %arg3: memref<1x384xf32, #tpu.memory_space<vmem>>, %arg4: memref<4x256xf32, #tpu.memory_space<vmem>>, %arg5: memref<16x384xf32, #tpu.memory_space<vmem>>, %arg6: memref<16x256xf32, #tpu.memory_space<vmem>>) attributes {dimension_semantics = [#tpu.dimension_semantics<parallel>], iteration_bounds = array<i64: 2>, scalar_prefetch = 0 : i64, scratch_operands = 0 : i64, tpu.core_type = #tpu.core_type<tc>, window_params = [{transform_indices = @transform_0, window_bounds = array<i64: 16, 4>}, {pipeline_mode = #tpu.pipeline_mode<synchronous>, transform_indices = @transform_1, window_bounds = array<i64: 4, 384>}, {pipeline_mode = #tpu.pipeline_mode<synchronous>, transform_indices = @transform_2, window_bounds = array<i64: 1, 384>}, {pipeline_mode = #tpu.pipeline_mode<synchronous>, transform_indices = @transform_3, window_bounds = array<i64: 4, 256>}, {transform_indices = @transform_4, window_bounds = array<i64: 16, 384>}, {transform_indices = @transform_5, window_bounds = array<i64: 16, 256>}]} {
    %c0 = arith.constant 0 : index
    %c0_0 = arith.constant 0 : index
    %0 = vector.load %arg1[%c0, %c0_0] : memref<16x4xf32, #tpu.memory_space<vmem>>, vector<16x4xf32>
    %c0_1 = arith.constant 0 : index
    %c0_2 = arith.constant 0 : index
    %1 = vector.load %arg2[%c0_1, %c0_2] : memref<4x384xf32, #tpu.memory_space<vmem>>, vector<4x384xf32>
    %2 = vector.extract_strided_slice %0 {offsets = [0, 0], sizes = [16, 1], strides = [1, 1]} : vector<16x4xf32> to vector<16x1xf32>
    %3 = vector.extract_strided_slice %1 {offsets = [0, 0], sizes = [1, 384], strides = [1, 1]} : vector<4x384xf32> to vector<1x384xf32>
    %4 = vector.broadcast %2 : vector<16x1xf32> to vector<16x384xf32>
    %5 = vector.broadcast %3 : vector<1x384xf32> to vector<16x384xf32>
    %6 = arith.mulf %4, %5 : vector<16x384xf32>
    %7 = vector.extract_strided_slice %0 {offsets = [0, 1], sizes = [16, 1], strides = [1, 1]} : vector<16x4xf32> to vector<16x1xf32>
    %8 = vector.extract_strided_slice %1 {offsets = [1, 0], sizes = [1, 384], strides = [1, 1]} : vector<4x384xf32> to vector<1x384xf32>
    %9 = vector.broadcast %7 : vector<16x1xf32> to vector<16x384xf32>
    %10 = vector.broadcast %8 : vector<1x384xf32> to vector<16x384xf32>
    %11 = arith.mulf %9, %10 : vector<16x384xf32>
    %12 = arith.addf %6, %11 : vector<16x384xf32>
    %13 = vector.extract_strided_slice %0 {offsets = [0, 2], sizes = [16, 1], strides = [1, 1]} : vector<16x4xf32> to vector<16x1xf32>
    %14 = vector.extract_strided_slice %1 {offsets = [2, 0], sizes = [1, 384], strides = [1, 1]} : vector<4x384xf32> to vector<1x384xf32>
    %15 = vector.broadcast %13 : vector<16x1xf32> to vector<16x384xf32>
    %16 = vector.broadcast %14 : vector<1x384xf32> to vector<16x384xf32>
    %17 = arith.mulf %15, %16 : vector<16x384xf32>
    %18 = arith.addf %12, %17 : vector<16x384xf32>
    %19 = vector.extract_strided_slice %0 {offsets = [0, 3], sizes = [16, 1], strides = [1, 1]} : vector<16x4xf32> to vector<16x1xf32>
    %20 = vector.extract_strided_slice %1 {offsets = [3, 0], sizes = [1, 384], strides = [1, 1]} : vector<4x384xf32> to vector<1x384xf32>
    %21 = vector.broadcast %19 : vector<16x1xf32> to vector<16x384xf32>
    %22 = vector.broadcast %20 : vector<1x384xf32> to vector<16x384xf32>
    %23 = arith.mulf %21, %22 : vector<16x384xf32>
    %24 = arith.addf %18, %23 : vector<16x384xf32>
    %c0_3 = arith.constant 0 : index
    %c0_4 = arith.constant 0 : index
    %25 = vector.load %arg3[%c0_3, %c0_4] : memref<1x384xf32, #tpu.memory_space<vmem>>, vector<1x384xf32>
    %26 = vector.broadcast %25 : vector<1x384xf32> to vector<16x384xf32>
    %27 = arith.addf %24, %26 : vector<16x384xf32>
    %cst = arith.constant dense<0xFF800000> : vector<16xf32>
    %28 = vector.multi_reduction <maximumf>, %27, %cst [1] : vector<16x384xf32> to vector<16xf32>
    %29 = vector.shape_cast %28 : vector<16xf32> to vector<16x1xf32>
    %30 = vector.broadcast %29 : vector<16x1xf32> to vector<16x384xf32>
    %31 = arith.subf %27, %30 : vector<16x384xf32>
    %32 = math.exp %31 : vector<16x384xf32>
    %cst_5 = arith.constant dense<0.000000e+00> : vector<16xf32>
    %33 = vector.multi_reduction <add>, %32, %cst_5 [1] : vector<16x384xf32> to vector<16xf32>
    %34 = vector.shape_cast %33 : vector<16xf32> to vector<16x1xf32>
    %35 = vector.broadcast %29 : vector<16x1xf32> to vector<16x384xf32>
    %36 = arith.subf %27, %35 : vector<16x384xf32>
    %37 = math.log %34 : vector<16x1xf32>
    %38 = vector.broadcast %37 : vector<16x1xf32> to vector<16x384xf32>
    %39 = arith.subf %36, %38 : vector<16x384xf32>
    %c0_6 = arith.constant 0 : index
    %c0_7 = arith.constant 0 : index
    %40 = vector.load %arg5[%c0_6, %c0_7] : memref<16x384xf32, #tpu.memory_space<vmem>>, vector<16x384xf32>
    tpu.vector_store %arg5[%c0_6, %c0_7], %39 {strides = array<i32>} : memref<16x384xf32, #tpu.memory_space<vmem>>, vector<16x384xf32>,
    %c0_8 = arith.constant 0 : index
    %c0_9 = arith.constant 0 : index
    %41 = vector.load %arg4[%c0_8, %c0_9] : memref<4x256xf32, #tpu.memory_space<vmem>>, vector<4x256xf32>
    %42 = vector.extract_strided_slice %0 {offsets = [0, 0], sizes = [16, 1], strides = [1, 1]} : vector<16x4xf32> to vector<16x1xf32>
    %43 = vector.extract_strided_slice %41 {offsets = [0, 0], sizes = [1, 256], strides = [1, 1]} : vector<4x256xf32> to vector<1x256xf32>
    %44 = vector.broadcast %42 : vector<16x1xf32> to vector<16x256xf32>
    %45 = vector.broadcast %43 : vector<1x256xf32> to vector<16x256xf32>
    %46 = arith.mulf %44, %45 : vector<16x256xf32>
    %47 = vector.extract_strided_slice %0 {offsets = [0, 1], sizes = [16, 1], strides = [1, 1]} : vector<16x4xf32> to vector<16x1xf32>
    %48 = vector.extract_strided_slice %41 {offsets = [1, 0], sizes = [1, 256], strides = [1, 1]} : vector<4x256xf32> to vector<1x256xf32>
    %49 = vector.broadcast %47 : vector<16x1xf32> to vector<16x256xf32>
    %50 = vector.broadcast %48 : vector<1x256xf32> to vector<16x256xf32>
    %51 = arith.mulf %49, %50 : vector<16x256xf32>
    %52 = arith.addf %46, %51 : vector<16x256xf32>
    %53 = vector.extract_strided_slice %0 {offsets = [0, 2], sizes = [16, 1], strides = [1, 1]} : vector<16x4xf32> to vector<16x1xf32>
    %54 = vector.extract_strided_slice %41 {offsets = [2, 0], sizes = [1, 256], strides = [1, 1]} : vector<4x256xf32> to vector<1x256xf32>
    %55 = vector.broadcast %53 : vector<16x1xf32> to vector<16x256xf32>
    %56 = vector.broadcast %54 : vector<1x256xf32> to vector<16x256xf32>
    %57 = arith.mulf %55, %56 : vector<16x256xf32>
    %58 = arith.addf %52, %57 : vector<16x256xf32>
    %59 = vector.extract_strided_slice %0 {offsets = [0, 3], sizes = [16, 1], strides = [1, 1]} : vector<16x4xf32> to vector<16x1xf32>
    %60 = vector.extract_strided_slice %41 {offsets = [3, 0], sizes = [1, 256], strides = [1, 1]} : vector<4x256xf32> to vector<1x256xf32>
    %61 = vector.broadcast %59 : vector<16x1xf32> to vector<16x256xf32>
    %62 = vector.broadcast %60 : vector<1x256xf32> to vector<16x256xf32>
    %63 = arith.mulf %61, %62 : vector<16x256xf32>
    %64 = arith.addf %58, %63 : vector<16x256xf32>
    %c0_10 = arith.constant 0 : index
    %c0_11 = arith.constant 0 : index
    %65 = vector.load %arg6[%c0_10, %c0_11] : memref<16x256xf32, #tpu.memory_space<vmem>>, vector<16x256xf32>
    tpu.vector_store %arg6[%c0_10, %c0_11], %64 {strides = array<i32>} : memref<16x256xf32, #tpu.memory_space<vmem>>, vector<16x256xf32>,
    return
  }
  func.func @transform_0(%arg0: i32) -> (i32, i32) {
    %c0_i32 = arith.constant 0 : i32
    %c0_i32_0 = arith.constant 0 : i32
    return %arg0, %c0_i32 : i32, i32
  }
  func.func @transform_1(%arg0: i32) -> (i32, i32) {
    %c0_i32 = arith.constant 0 : i32
    %c0_i32_0 = arith.constant 0 : i32
    %c0_i32_1 = arith.constant 0 : i32
    return %c0_i32, %c0_i32_0 : i32, i32
  }
  func.func @transform_2(%arg0: i32) -> (i32, i32) {
    %c0_i32 = arith.constant 0 : i32
    %c0_i32_0 = arith.constant 0 : i32
    %c0_i32_1 = arith.constant 0 : i32
    return %c0_i32, %c0_i32_0 : i32, i32
  }
  func.func @transform_3(%arg0: i32) -> (i32, i32) {
    %c0_i32 = arith.constant 0 : i32
    %c0_i32_0 = arith.constant 0 : i32
    %c0_i32_1 = arith.constant 0 : i32
    return %c0_i32, %c0_i32_0 : i32, i32
  }
  func.func @transform_4(%arg0: i32) -> (i32, i32) {
    %c0_i32 = arith.constant 0 : i32
    %c0_i32_0 = arith.constant 0 : i32
    return %arg0, %c0_i32 : i32, i32
  }
  func.func @transform_5(%arg0: i32) -> (i32, i32) {
    %c0_i32 = arith.constant 0 : i32
    %c0_i32_0 = arith.constant 0 : i32
    return %arg0, %c0_i32 : i32, i32
  }
}

</mosaic_0001>

<bundles_post_ra>
// kernel: model_forward.1
= control target key start
LH: loop header
LB: loop body
LE: loop exit
PB: predicated region body
PF: predicated region fallthrough
CT: control target
= control target key end

     0   :  { %s674_s18 = smov 0   ;;  %s753_s0 = inlined_call_operand.vmem [shape: f32[32,4], index: 0, kind: input, shape index: {}]   ;;  %s754_s1 = inlined_call_operand.vmem [shape: f32[4,384], index: 1, kind: input, shape index: {}]   ;;  %s755_s2 = inlined_call_operand.vmem [shape: f32[1,384], index: 2, kind: input, shape index: {}]   ;;  %s756_s3 = inlined_call_operand.vmem [shape: f32[4,256], index: 3, kind: input, shape index: {}]   ;;  %s757_s4 = inlined_call_operand.vmem [shape: f32[32,384], index: 4, kind: output, shape index: {0}]   ;;  %s758_s5 = inlined_call_operand.vmem [shape: f32[32,256], index: 5, kind: output, shape index: {1}]  }
   0x1 LB: > { %s580_s19 = sadd.s32 4294967295, %s638_s18   ;;  %p584_p0 = scmp.ge.s32.totalorder %s638_s18, 1  ;;  %s638_s18 = sphi %s674_s18, %s16_s18  }
   0x2   : > { %p191_p1 = scmp.lt.s32.totalorder %s638_s18, 3 }
   0x4   : > { %p192_p2 = pnand %p584_p0, %p191_p1 }
   0x5   : > { %s585_s20 = sshll.u32 (!%p192_p2), %s580_s19, 1 }
   0x6   : > { %195 = sbr.rel (%p192_p2) target bundleno = 428 (0x1ac), region = 36  ;;  %p227_p3 = scmp.lt.s32.totalorder (!%p192_p2), %s585_s20, 3 }
   0xb   : > { %v640_v0 = vmov 0   ;;  %v641_v1 = vmov 2   ;;  %s760_s20 = smov (!%p227_p3, %s585_s20), 3  ;;  %v642_v4 = vmov 1   ;;  %v643_v5 = vmov 3   ;;  %v248_v7 = vld [vmem:[%s754_s1] sm:$0xff] }
   0xc   : > { %610 = vset.pattern.permute.xlu1 %v640_v0  ;;  %608 = vset.pattern.permute.xlu0 %v640_v0  ;;  %s586_s21 = sshll.u32 %s760_s20, 3  ;;  %v249_v8 = vld [vmem:[%s754_s1 + $0x8] sm:$0xf]  ;;  %v314_v9 = vperm.slane %v248_v7, 2  ;;  %v315_v10 = vperm.slane %v248_v7, 6  ;;  %v428_v12 = vld [vmem:[%s756_s3] sm:$0xff] }
   0xd   : > { %612 = vset.pattern.permute.xlu2 %v641_v1  ;;  %s230_s24 = scalar_lea.vmem %s753_s0, %s586_s21  ;;  %v316_v11 = vperm.slane %v249_v8, 2  ;;  %v454_v13 = vperm.slane %v428_v12, 2  ;;  %v455_v14 = vperm.slane %v428_v12, 6  ;;  %v262_v18 = vperm.slane %v248_v7, 0  ;;  %v710_v53 = vld [vmem:[%s755_s2] sm:$0x7] }
   0xe   : > { %v247_v2 = vld [vmem:[%s230_s24 + $0x8] sm:$0xff]  ;;  %v246_v3 = vld [vmem:[%s230_s24] sm:$0xff]  ;;  %v320_v16 = vperm.slane %v314_v9, 2  ;;  %v321_v17 = vperm.slane %v315_v10, 2  ;;  %v263_v20 = vperm.slane %v248_v7, 4  ;;  %v264_v21 = vperm.slane %v249_v8, 0 }
   0xf   : > { %257 = vperm.xlu1 %610, %v247_v2   ;;  %252 = vperm.xlu0 %608, %v246_v3   ;;  %v322_v19 = vperm.slane %v316_v11, 2  ;;  %v430_v22 = vperm.slane %v428_v12, 0  ;;  %v458_v23 = vperm.slane %v454_v13, 2  ;;  %v431_v24 = vperm.slane %v428_v12, 4  ;;  %s594_s8 = sshll.u32 %s760_s20, 4  ;;  %s595_s12 = smul.u32 24, %s760_s20 }
  0x10   : > { %307 = vperm.xlu2 %612, %v246_v3   ;;  %v285_v25 = vperm.slane %v248_v7, 1  ;;  %v286_v26 = vperm.slane %v248_v7, 5  ;;  %v459_v27 = vperm.slane %v455_v14, 2  ;;  %v287_v28 = vperm.slane %v249_v8, 1  ;;  %s244_s11 = scalar_lea.vmem %s758_s5, %s594_s8 }
  0x11   : > { %v440_v29 = vperm.slane %v428_v12, 1  ;;  %v441_v30 = vperm.slane %v428_v12, 5  ;;  %v268_v31 = vperm.slane %v262_v18, 0  ;;  %v343_v32 = vperm.slane %v248_v7, 3  ;;  %s237_s15 = scalar_lea.vmem %s757_s4, %s595_s12 }
  0x12   : > { %v345_v33 = vperm.slane %v249_v8, 3  ;;  %v344_v34 = vperm.slane %v248_v7, 7  ;;  %v269_v35 = vperm.slane %v263_v20, 0  ;;  %v270_v36 = vperm.slane %v264_v21, 0 }
  0x13   : > { %v434_v37 = vperm.slane %v430_v22, 0  ;;  %v468_v40 = vperm.slane %v428_v12, 3  ;;  %v435_v41 = vperm.slane %v431_v24, 0  ;;  %v291_v42 = vperm.slane %v285_v25, 1 }
  0x14   : > { %v292_v43 = vperm.slane %v286_v26, 1  ;;  %v469_v44 = vperm.slane %v428_v12, 7  ;;  %v293_v46 = vperm.slane %v287_v28, 1  ;;  %v444_v47 = vperm.slane %v440_v29, 1 }
  0x15   : > { %v445_v48 = vperm.slane %v441_v30, 1  ;;  %v701_v50 = vperm.slane %v343_v32, 3  ;;  %v703_v51 = vperm.slane %v345_v33, 3  ;;  %v705_v52 = vperm.slane %v344_v34, 3 }
  0x16   : > { %v714_v57 = vperm.slane %v468_v40, 3  ;;  %v473_v62 = vperm.slane %v469_v44, 3  ;;  %v366_v1 = vperm.slane %v710_v53, 0 }
  0x17   : > { %611 = vset.pattern.permute.xlu1 %v642_v4  ;;  %609 = vset.pattern.permute.xlu0 %v642_v4 }
  0x18   : > { %282 = vperm.xlu1 %611, %v247_v2   ;;  %278 = vperm.xlu0 %609, %v246_v3  }
  0x19   : > { %311 = vperm.xlu2 %612, %v247_v2  }
  0x20   : > { %613 = vset.pattern.permute.xlu1 %v643_v5  ;;  %615 = vset.pattern.permute.xlu0 %v643_v5 }
  0x21   : > { %336 = vperm.xlu1 %613, %v246_v3   ;;  %614 = vset.pattern.permute.xlu2 %v643_v5 }
  0x22   : > { %340 = vperm.xlu2 %614, %v247_v2   ;;  %v367_v2 = vperm.slane %v710_v53, 1 }
  0x6a   : > { %v308_v6 = vpop.permute.xlu2 %307 }
  0x6b   : > { %v697_v45 = vmul.f32 %v320_v16, %v308_v6  ;;  %v699_v49 = vmul.f32 %v321_v17, %v308_v6  ;;  %v712_v54 = vmul.f32 %v322_v19, %v308_v6  ;;  %v460_v55 = vmul.f32 %v458_v23, %v308_v6 }
  0x6c   : > { %v461_v56 = vmul.f32 %v459_v27, %v308_v6  ;;  %v368_v6 = vperm.slane %v710_v53, 2 }
  0x73   : > { %v312_v15 = vpop.permute.xlu2 %311 }
  0x74   : > { %v326_v59 = vmul.f32 %v320_v16, %v312_v15  ;;  %v327_v60 = vmul.f32 %v321_v17, %v312_v15  ;;  %v328_v61 = vmul.f32 %v322_v19, %v312_v15  ;;  %v462_v63 = vmul.f32 %v458_v23, %v312_v15 }
  0x75   : > { %v463_v0 = vmul.f32 %v459_v27, %v312_v15 }
  0x7c   : > { %v341_v58 = vpop.permute.xlu2 %340 }
  0x7d   : > { %v355_v3 = vmul.f32 %v701_v50, %v341_v58  ;;  %v357_v4 = vmul.f32 %v703_v51, %v341_v58  ;;  %v356_v5 = vmul.f32 %v705_v52, %v341_v58  ;;  %v476_v40 = vmul.f32 %v714_v57, %v341_v58 }
  0x81   : > { %v258_v38 = vpop.permute.xlu1 %257  ;;  %v253_v39 = vpop.permute.xlu0 %252 }
  0x82   : > { %v274_v7 = vmul.f32 %v268_v31, %v258_v38  ;;  %v275_v8 = vmul.f32 %v269_v35, %v258_v38  ;;  %v276_v9 = vmul.f32 %v270_v36, %v258_v38  ;;  %v438_v10 = vmul.f32 %v434_v37, %v258_v38 }
  0x83   : > { %v439_v11 = vmul.f32 %v435_v41, %v258_v38  ;;  %v271_v12 = vmul.f32 %v268_v31, %v253_v39  ;;  %v272_v13 = vmul.f32 %v269_v35, %v253_v39  ;;  %v273_v14 = vmul.f32 %v270_v36, %v253_v39 }
  0x84   : > { %v436_v21 = vmul.f32 %v434_v37, %v253_v39  ;;  %v437_v29 = vmul.f32 %v435_v41, %v253_v39  ;;  %v477_v37 = vmul.f32 %v473_v62, %v341_v58 }
  0x8a   : > { %v283_v15 = vpop.permute.xlu1 %282  ;;  %v279_v16 = vpop.permute.xlu0 %278 }
  0x8b   : > { %v297_v17 = vmul.f32 %v291_v42, %v283_v15  ;;  %v298_v18 = vmul.f32 %v292_v43, %v283_v15  ;;  %v299_v19 = vmul.f32 %v293_v46, %v283_v15  ;;  %v448_v20 = vmul.f32 %v444_v47, %v283_v15 }
  0x8c   : > { %v449_v22 = vmul.f32 %v445_v48, %v283_v15  ;;  %v294_v23 = vmul.f32 %v291_v42, %v279_v16  ;;  %v296_v24 = vmul.f32 %v293_v46, %v279_v16  ;;  %v295_v27 = vmul.f32 %v292_v43, %v279_v16 }
  0x8d   : > { %v303_v25 = vadd.f32 %v297_v17, %v274_v7  ;;  %v305_v26 = vadd.f32 %v299_v19, %v276_v9  ;;  %v446_v28 = vmul.f32 %v444_v47, %v279_v16  ;;  %v452_v30 = vadd.f32 %v448_v20, %v438_v10 }
  0x8e   : > { %v300_v31 = vadd.f32 %v294_v23, %v271_v12  ;;  %v447_v32 = vmul.f32 %v445_v48, %v279_v16  ;;  %v302_v33 = vadd.f32 %v296_v24, %v273_v14  ;;  %v304_v35 = vadd.f32 %v298_v18, %v275_v8 }
  0x8f   : > { %v450_v34 = vadd.f32 %v446_v28, %v436_v21  ;;  %v332_v36 = vadd.f32 %v326_v59, %v303_v25  ;;  %v334_v44 = vadd.f32 %v328_v61, %v305_v26  ;;  %v453_v42 = vadd.f32 %v449_v22, %v439_v11 }
  0x90   : > { %v451_v38 = vadd.f32 %v447_v32, %v437_v29  ;;  %v333_v46 = vadd.f32 %v327_v60, %v304_v35  ;;  %v301_v9 = vadd.f32 %v295_v27, %v272_v13  ;;  %v466_v43 = vadd.f32 %v462_v63, %v452_v30 }
  0x91   : > { %v361_v7 = vadd.f32 %v355_v3, %v332_v36  ;;  %v464_v39 = vadd.f32 %v460_v55, %v450_v34  ;;  %v363_v47 = vadd.f32 %v357_v4, %v334_v44  ;;  %v329_v59 = vadd.f32 %v697_v45, %v300_v31 }
  0x92   : > { %v465_v41 = vadd.f32 %v461_v56, %v451_v38  ;;  %v362_v48 = vadd.f32 %v356_v5, %v333_v46  ;;  %v331_v12 = vadd.f32 %v712_v54, %v302_v33  ;;  %v467_v55 = vadd.f32 %v463_v0, %v453_v42 }
  0x93   : > { %v337_v10 = vpop.permute.xlu1 %336  ;;  %v375_v8 = vadd.f32 %v366_v1, %v361_v7  ;;  %v377_v56 = vadd.f32 %v368_v6, %v363_v47  ;;  %v330_v63 = vadd.f32 %v699_v49, %v301_v9  ;;  %v480_v11 = vadd.f32 %v476_v40, %v466_v43 }
  0x94   : > { %v352_v58 = vmul.f32 %v701_v50, %v337_v10  ;;  %v354_v60 = vmul.f32 %v703_v51, %v337_v10  ;;  %v474_v61 = vmul.f32 %v714_v57, %v337_v10  ;;  %v475_v3 = vmul.f32 %v473_v62, %v337_v10 }
  0x95   : > { %v353_v45 = vmul.f32 %v705_v52, %v337_v10  ;;  %v376_v51 = vadd.f32 %v367_v2, %v362_v48  ;;  %v382_v57 = vmax.f32 %v375_v8, %v377_v56  ;;  %v481_v49 = vadd.f32 %v477_v37, %v467_v55  ;;  %484 = vst [vmem:[%s244_s11 + $0x10] sm:$0xff] %v480_v11 }
  0x96   : > { %v478_v54 = vadd.f32 %v474_v61, %v464_v39  ;;  %v479_v4 = vadd.f32 %v475_v3, %v465_v41  ;;  %v358_v50 = vadd.f32 %v352_v58, %v329_v59  ;;  %v360_v5 = vadd.f32 %v354_v60, %v331_v12 }
  0x97   : > { %v359_v62 = vadd.f32 %v353_v45, %v330_v63  ;;  %v383_v52 = vmax.f32 %v382_v57, %v376_v51  ;;  %485 = vst [vmem:[%s244_s11 + $0x18] sm:$0xff] %v481_v49 }
  0x98   : > { %482 = vst [vmem:[%s244_s11] sm:$0xff] %v478_v54  ;;  %v372_v0 = vadd.f32 %v366_v1, %v358_v50  ;;  %v374_v13 = vadd.f32 %v368_v6, %v360_v5 }
  0x99   : > { %483 = vst [vmem:[%s244_s11 + $0x8] sm:$0xff] %v479_v4  ;;  %v373_v14 = vadd.f32 %v367_v2, %v359_v62  ;;  %384 = vmax.xlane.f32.xlu1 %v383_v52 }
  0x9a   : > { %v378_v15 = vmax.f32 %v372_v0, %v374_v13 }
  0x9c   : > { %v379_v16 = vmax.f32 %v378_v15, %v373_v14 }
  0x9e   : > { %380 = vmax.xlane.f32.xlu0 %v379_v16 }
 0x10c   : > { %v385_v17 = vpop.xlane.xlu1 %384 }
 0x10d   : > { %v389_v19 = vsub.f32 %v375_v8, %v385_v17  ;;  %v390_v22 = vsub.f32 %v376_v51, %v385_v17  ;;  %v391_v53 = vsub.f32 %v377_v56, %v385_v17 }
 0x10f   : > { %v398_v25 = vmul.f32 1.442695, %v389_v19  ;;  %v400_v26 = vmul.f32 1.442695, %v390_v22  ;;  %v402_v28 = vmul.f32 1.442695, %v391_v53 }
 0x111   : > { %v381_v18 = vpop.xlane.xlu0 %380 }
 0x112   : > { %v386_v20 = vsub.f32 %v372_v0, %v381_v18  ;;  %v387_v1 = vsub.f32 %v373_v14, %v381_v18  ;;  %v388_v21 = vsub.f32 %v374_v13, %v381_v18 }
 0x114   : > { %v392_v6 = vmul.f32 1.442695, %v386_v20  ;;  %v394_v23 = vmul.f32 1.442695, %v387_v1  ;;  %v396_v24 = vmul.f32 1.442695, %v388_v21 }
 0x116   : > { %616 = vpow2.f32 %v392_v6 }
 0x117   : > { %618 = vpow2.f32 %v394_v23 }
 0x118   : > { %620 = vpow2.f32 %v396_v24 }
 0x119   : > { %622 = vpow2.f32 %v398_v25 }
 0x11a   : > { %624 = vpow2.f32 %v400_v26 }
 0x11b   : > { %626 = vpow2.f32 %v402_v28 }
 0x11c   : > { %v617_v2 = vpop.eup %616 }
 0x11d   : > { %v619_v27 = vpop.eup %618 }
 0x11e   : > { %v404_v29 = vadd.f32 %v619_v27, %v617_v2  ;;  %v621_v30 = vpop.eup %620 }
 0x11f   : > { %v623_v31 = vpop.eup %622 }
 0x120   : > { %v405_v32 = vadd.f32 %v621_v30, %v404_v29  ;;  %v625_v33 = vpop.eup %624 }
 0x121   : > { %v408_v34 = vadd.f32 %v625_v33, %v623_v31  ;;  %v627_v35 = vpop.eup %626 }
 0x122   : > { %406 = vadd.xlane.f32.xlu2 %v405_v32 }
 0x123   : > { %v409_v36 = vadd.f32 %v627_v35, %v408_v34 }
 0x12a   : > { %410 = vadd.xlane.f32.xlu2 %v409_v36 }
 0x195   : > { %v407_v38 = vpop.xlane.xlu2 %406 }
 0x196   : > { %628 = vlog2.f32 %v407_v38 }
 0x19c   : > { %v629_v40 = vpop.eup %628 }
 0x19d   : > { %v413_v37 = vmul.f32 0.6931472, %v629_v40  ;;  %v411_v44 = vpop.xlane.xlu2 %410 }
 0x19e   : > { %630 = vlog2.f32 %v411_v44 }
 0x19f   : > { %v416_v42 = vsub.f32 %v386_v20, %v413_v37  ;;  %v417_v46 = vsub.f32 %v387_v1, %v413_v37  ;;  %v418_v7 = vsub.f32 %v388_v21, %v413_v37 }
 0x1a1   : > { %422 = vst [vmem:[%s237_s15] sm:$0xff] %v416_v42 }
 0x1a2   : > { %423 = vst [vmem:[%s237_s15 + $0x8] sm:$0xff] %v417_v46 }
 0x1a3   : > { %424 = vst [vmem:[%s237_s15 + $0x10] sm:$0xff] %v418_v7 }
 0x1a4   : > { %v631_v9 = vpop.eup %630 }
 0x1a5   : > { %v415_v43 = vmul.f32 0.6931472, %v631_v9 }
 0x1a7   : > { %v419_v39 = vsub.f32 %v389_v19, %v415_v43  ;;  %v420_v41 = vsub.f32 %v390_v22, %v415_v43  ;;  %v421_v47 = vsub.f32 %v391_v53, %v415_v43 }
 0x1a9   : > { %425 = vst [vmem:[%s237_s15 + $0x18] sm:$0xff] %v419_v39 }
 0x1aa   : > { %426 = vst [vmem:[%s237_s15 + $0x20] sm:$0xff] %v420_v41 }
 0x1ab   : > { %427 = vst [vmem:[%s237_s15 + $0x28] sm:$0xff] %v421_v47 }
 0x1ac PF: > { %s16_s18 = sadd.s32 1, %s638_s18  }
 0x1ad   : > { %p13_p4 = scmp.ge.s32.totalorder %s16_s18, 4  }
 0x1af   :  { %15 = sbr.rel (!%p13_p4) target bundleno = 1 (0x1), region = 78 }

</bundles_post_ra>
